<compile_context>
chip_gen: v6e
topology: v6e:2x2x1
jax: 0.10.0
libtpu: 0.0.40
codegen_flags: <defaults>
</compile_context>

<pallas_src>
import jax
import jax.numpy as jnp
from jax.experimental import pallas as pl
from jax.experimental.pallas import tpu as pltpu


def _round_up(x, m):
    return ((x + m - 1) // m) * m


def _patch_proj_kernel(x_ref, w_ref, b_ref, o_ref):
    # x_ref: [TM, K] bf16 tile (pipelined over the grid)
    # w_ref: [K, E]  bf16 (resident across the grid)
    # b_ref: [1, E]  f32  (resident)
    # o_ref: [TM, E] bf16
    acc = jnp.dot(x_ref[...], w_ref[...], preferred_element_type=jnp.float32)
    # Bias add stays on the f32 MXU accumulator; only the final store narrows to bf16.
    o_ref[...] = (acc + b_ref[...]).astype(o_ref.dtype)


def patch_proj_pallas(patches, weight, bias, *, tm_target=8192, out_dtype=jnp.bfloat16):
    """patches: [M, K] bf16, weight: [K, E] bf16, bias: [E] f32 -> [M, E] out_dtype."""
    M, K = patches.shape
    E = weight.shape[1]

    # Tile the M dimension: multiples of 8 sublanes, big enough to amortize per-step
    # overhead, small enough that double-buffered in/out tiles fit v5e's 16 MiB scoped VMEM.
    if M <= 8:
        TM = M                                   # single block == full dim (allowed)
    else:
        TM = min(tm_target, _round_up(M, 8))
        if pl.cdiv(M, TM) < 2:
            # v7x has 2 TensorCores; give the "parallel" grid >= 2 tiles to shard across them.
            TM = _round_up(pl.cdiv(M, 2), 8)
    grid = (pl.cdiv(M, TM),)                     # trailing partial block masked by Pallas

    bias2d = bias.reshape(1, E).astype(jnp.float32)

    cost = pl.CostEstimate(
        flops=2 * M * K * E,
        transcendentals=0,
        bytes_accessed=(M * K * 2          # bf16 patches read
                        + K * E * 2        # bf16 weight read
                        + E * 4            # f32 bias read
                        + M * E * 2),      # bf16 output write
    )

    return pl.pallas_call(
        _patch_proj_kernel,
        out_shape=jax.ShapeDtypeStruct((M, E), out_dtype),
        grid_spec=pltpu.PrefetchScalarGridSpec(
            num_scalar_prefetch=0,
            grid=grid,
            in_specs=[
                pl.BlockSpec((TM, K), lambda i: (i, 0)),   # M-tiled, double-buffered
                pl.BlockSpec((K, E), lambda i: (0, 0)),    # weight resident in VMEM
                pl.BlockSpec((1, E), lambda i: (0, 0)),    # bias resident in VMEM
            ],
            out_specs=pl.BlockSpec((TM, E), lambda i: (i, 0)),
        ),
        compiler_params=pltpu.CompilerParams(
            # Independent M tiles: shard across both TCs on v7x.
            dimension_semantics=("parallel",),
            # Allow the cast/patchify-transpose producer of operand 0 to fuse into the
            # pallas_call's input pipeline (avoids a materialized [M, K] HBM round trip).
            allow_input_fusion=[True, False, False],
        ),
        cost_estimate=cost,
    )(patches, weight, bias2d)


class PatchEmbedPallas:
    """JAX/Pallas equivalent of the PyTorch PatchEmbed (norm_layer=None -> Identity)."""

    def __init__(self, patch_size=4, in_c=3, embed_dim=96, key=None):
        self.patch_size = (patch_size, patch_size)
        self.in_chans = in_c
        self.embed_dim = embed_dim
        if key is None:
            key = jax.random.PRNGKey(0)
        kw, kb = jax.random.split(key)
        # Conv2d weight: [embed_dim, in_c, p, p]; bias: [embed_dim]
        fan_in = in_c * patch_size * patch_size
        bound = 1.0 / jnp.sqrt(fan_in)
        self.conv_weight = jax.random.uniform(
            kw, (embed_dim, in_c, patch_size, patch_size),
            minval=-bound, maxval=bound, dtype=jnp.float32)
        self.conv_bias = jax.random.uniform(
            kb, (embed_dim,), minval=-bound, maxval=bound, dtype=jnp.float32)
        # norm_layer is None in the reference config -> Identity (no-op).

    def __call__(self, x):
        # x: [B, C, H, W] (NCHW, same as PyTorch)
        B, C, H, W = x.shape
        ph, pw = self.patch_size
        pad_h = (ph - H % ph) % ph
        pad_w = (pw - W % pw) % pw
        if pad_h or pad_w:
            # F.pad(x, (0, pad_w, 0, pad_h)) pads the end of W then the end of H
            x = jnp.pad(x, ((0, 0), (0, 0), (0, pad_h), (0, pad_w)))
        Hp = (H + pad_h) // ph
        Wp = (W + pad_w) // pw

        # bf16 before patchify: halves producer bytes and feeds the MXU natively
        # (f32 accumulation inside the kernel).
        xb = x.astype(jnp.bfloat16)

        # Non-overlapping patches flattened in (C, kh, kw) order to match Conv2d's
        # reduction order over weight[o, c, kh, kw].  With allow_input_fusion this
        # producer can be folded into the pallas_call input DMA under jit.
        xp = xb.reshape(B, C, Hp, ph, Wp, pw)
        xp = jnp.transpose(xp, (0, 2, 4, 1, 3, 5))            # [B, Hp, Wp, C, ph, pw]
        patches = xp.reshape(B * Hp * Wp, C * ph * pw)        # [M, K] bf16

        w = self.conv_weight.reshape(self.embed_dim, C * ph * pw).T  # [K, E]
        out = patch_proj_pallas(patches,
                                w.astype(jnp.bfloat16),
                                self.conv_bias.astype(jnp.float32))
        out = out.reshape(B, Hp * Wp, self.embed_dim)          # [B, N, E] bf16
        return out, Hp, Wp


if __name__ == "__main__":
    key = jax.random.PRNGKey(0)
    kx, kp = jax.random.split(key)

    B, C, H, W = 2, 4, 16, 16
    patch_size, embed_dim = 4, 32
    x = jax.random.normal(kx, (B, C, H, W), dtype=jnp.float32)

    module = PatchEmbedPallas(patch_size=patch_size, in_c=C,
                              embed_dim=embed_dim, key=kp)

    # jit the whole forward so the patchify producer and the pallas_call live in one XLA
    # computation (prerequisite for input fusion).
    fwd = jax.jit(module.__call__)
    out, Hp, Wp = fwd(x)
    out = jax.block_until_ready(out)
    Hp, Wp = int(Hp), int(Wp)

    # Reference 1: plain-JAX conv-as-matmul with the same bf16-rounded inputs, f32 math
    # (matches the MXU bf16 x bf16 -> f32 path; tolerance covers the bf16 output rounding).
    xb = x.astype(jnp.bfloat16).astype(jnp.float32)
    xp = xb.reshape(B, C, Hp, patch_size, Wp, patch_size)
    xp = jnp.transpose(xp, (0, 2, 4, 1, 3, 5)).reshape(B, Hp * Wp, -1)
    w_ref = module.conv_weight.reshape(embed_dim, -1).T.astype(jnp.bfloat16).astype(jnp.float32)
    ref = xp @ w_ref + module.conv_bias[None, None, :]

    # Reference 2: full-f32 PyTorch-equivalent math with a loose (bf16 input+output) tolerance.
    xpf = x.reshape(B, C, Hp, patch_size, Wp, patch_size)
    xpf = jnp.transpose(xpf, (0, 2, 4, 1, 3, 5)).reshape(B, Hp * Wp, -1)
    ref_f32 = xpf @ module.conv_weight.reshape(embed_dim, -1).T + module.conv_bias[None, None, :]

    out_f32 = out.astype(jnp.float32)
    assert out.shape == (B, Hp * Wp, embed_dim), out.shape
    assert out.dtype == jnp.bfloat16, out.dtype
    assert jnp.allclose(out_f32, ref, atol=3e-2, rtol=3e-2), \
        float(jnp.max(jnp.abs(out_f32 - ref)))
    assert jnp.allclose(out_f32, ref_f32, atol=6e-2, rtol=6e-2), \
        float(jnp.max(jnp.abs(out_f32 - ref_f32)))
    print("KERNEL_OK")
</pallas_src>

<mosaic_0001>
module attributes {stable_mosaic.version = 11 : i64} {
  func.func @_patch_proj_kernel(%arg0: i32, %arg1: memref<16x64xbf16, #tpu.memory_space<vmem>>, %arg2: memref<64x32xbf16, #tpu.memory_space<vmem>>, %arg3: memref<1x32xf32, #tpu.memory_space<vmem>>, %arg4: memref<16x32xbf16, #tpu.memory_space<vmem>>) attributes {dimension_semantics = [#tpu.dimension_semantics<parallel>], iteration_bounds = array<i64: 2>, scalar_prefetch = 0 : i64, scratch_operands = 0 : i64, tpu.core_type = #tpu.core_type<tc>, window_params = [{transform_indices = @transform_0, window_bounds = array<i64: 16, 64>}, {pipeline_mode = #tpu.pipeline_mode<synchronous>, transform_indices = @transform_1, window_bounds = array<i64: 64, 32>}, {pipeline_mode = #tpu.pipeline_mode<synchronous>, transform_indices = @transform_2, window_bounds = array<i64: 1, 32>}, {transform_indices = @transform_3, window_bounds = array<i64: 16, 32>}]} {
    %c0 = arith.constant 0 : index
    %c0_0 = arith.constant 0 : index
    %0 = vector.load %arg1[%c0, %c0_0] : memref<16x64xbf16, #tpu.memory_space<vmem>>, vector<16x64xbf16>
    %c0_1 = arith.constant 0 : index
    %c0_2 = arith.constant 0 : index
    %1 = vector.load %arg2[%c0_1, %c0_2] : memref<64x32xbf16, #tpu.memory_space<vmem>>, vector<64x32xbf16>
    %cst = arith.constant dense<0.000000e+00> : vector<16x32xf32>
    %2 = tpu.matmul %0, %1, %cst {dimension_numbers = #tpu.dot_dimension_numbers<[1], [0], [0], [1], [0, 0, 1, 1], [], []>} : vector<16x64xbf16>, vector<64x32xbf16>, vector<16x32xf32> -> vector<16x32xf32>
    %c0_3 = arith.constant 0 : index
    %c0_4 = arith.constant 0 : index
    %3 = vector.load %arg3[%c0_3, %c0_4] : memref<1x32xf32, #tpu.memory_space<vmem>>, vector<1x32xf32>
    %4 = vector.broadcast %3 : vector<1x32xf32> to vector<16x32xf32>
    %5 = arith.addf %2, %4 : vector<16x32xf32>
    %6 = arith.truncf %5 : vector<16x32xf32> to vector<16x32xbf16>
    %c0_5 = arith.constant 0 : index
    %c0_6 = arith.constant 0 : index
    %7 = vector.load %arg4[%c0_5, %c0_6] : memref<16x32xbf16, #tpu.memory_space<vmem>>, vector<16x32xbf16>
    tpu.vector_store %arg4[%c0_5, %c0_6], %6 {strides = array<i32>} : memref<16x32xbf16, #tpu.memory_space<vmem>>, vector<16x32xbf16>,
    return
  }
  func.func @transform_0(%arg0: i32) -> (i32, i32) {
    %c0_i32 = arith.constant 0 : i32
    %c0_i32_0 = arith.constant 0 : i32
    return %arg0, %c0_i32 : i32, i32
  }
  func.func @transform_1(%arg0: i32) -> (i32, i32) {
    %c0_i32 = arith.constant 0 : i32
    %c0_i32_0 = arith.constant 0 : i32
    %c0_i32_1 = arith.constant 0 : i32
    return %c0_i32, %c0_i32_0 : i32, i32
  }
  func.func @transform_2(%arg0: i32) -> (i32, i32) {
    %c0_i32 = arith.constant 0 : i32
    %c0_i32_0 = arith.constant 0 : i32
    %c0_i32_1 = arith.constant 0 : i32
    return %c0_i32, %c0_i32_0 : i32, i32
  }
  func.func @transform_3(%arg0: i32) -> (i32, i32) {
    %c0_i32 = arith.constant 0 : i32
    %c0_i32_0 = arith.constant 0 : i32
    return %arg0, %c0_i32 : i32, i32
  }
}

</mosaic_0001>

<bundles_post_ra>
// kernel: a_call__.1
= control target key start
LH: loop header
LB: loop body
LE: loop exit
PB: predicated region body
PF: predicated region fallthrough
CT: control target
= control target key end

     0   :  { %8 = vsyncpa [#allocation3], 0  ;;  %s643_s0 = inlined_call_operand.vmem [shape: bf16[32,64], index: 0, kind: input, shape index: {}]   ;;  %s644_s1 = inlined_call_operand.vmem [shape: bf16[64,32], index: 1, kind: input, shape index: {}]   ;;  %s645_s2 = inlined_call_operand.vmem [shape: f32[1,32], index: 2, kind: input, shape index: {}]   ;;  %s646_s3 = inlined_call_operand.hbm [shape: bf16[32,32], index: 3, kind: output, shape index: {}]  }
   0x1   :  { %10 = vsyncpa [#allocation3 + $0x1], 0  ;;  %s527_s12 = smov 0   ;;  %s529_s13 = smov 0  }
   0x2   :  { %s531_s14 = smov 0   ;;  %s533_s15 = smov 0  }
   0x3 LB: > { %s548_s16 = sadd.s32 4294967295, %s500_s15   ;;  %s351_s17 = sadd.s32 4294967294, %s500_s15   ;;  %s500_s15 = sphi %s533_s15, %s652_s15   ;;  %s496_s14 = sphi %s531_s14, %s651_s14   ;;  %s492_s13 = sphi %s529_s13, %s650_s13   ;;  %s488_s12 = sphi %s527_s12, %s649_s12  }
   0x4   : > { %s552_s18 = sadd.s32 1, %s500_s15   ;;  %s91_s19 = sadd.s32 1, %s496_s14 }
   0x5   : > { %s88_s20 = ssub.s32 %s500_s15, %s552_s18  ;;  %p101_p0 = scmp.ne.s32.totalorder %s496_s14, %s492_s13 }
   0x6   : > { %p89_p1 = scmp.eq.s32.totalorder %s88_s20, 0  ;;  %p102_p2 = scmp.eq.s32.totalorder %s548_s16, 1 }
   0x7   : > { %p107_p3 = scmp.ne.s32.totalorder %s492_s13, %s488_s12  ;;  %p108_p4 = scmp.eq.s32.totalorder %s351_s17, 1 }
   0x8   : > { %s563_s21 = scalar_select %p89_p1, %s496_s14, %s91_s19  }
   0x9   : > { %p565_p5 = por %p102_p2, %p101_p0  ;;  %p569_p6 = por %p108_p4, %p107_p3 }
   0xa   : > { %p354_p7 = scmp.ge.s32.totalorder %s500_s15, 1  ;;  %p141_p8 = scmp.lt.s32.totalorder %s500_s15, 3 }
   0xc   : > { %p142_p9 = pnand %p354_p7, %p141_p8 }
   0xd   : > { %s356_s28 = sshll.u32 (!%p142_p9), %s548_s16, 1  ;;  %s162_s10 = sand.u32 (!%p142_p9), 1, %s492_s13  }
   0xe   : > { %145 = sbr.rel (%p142_p9) target bundleno = 251 (0xfb), region = 32  ;;  %p166_p10 = scmp.lt.s32.totalorder (!%p142_p9), %s356_s28, 3 }
   0xf   : > { %s355_s19 = sshll.u32 (!%p142_p9), %s162_s10, 3  ;;  %s374_s25 = sshll.u32 (!%p142_p9), %s548_s16, 7 }
  0x10   : > { %s164_s20 = scalar_lea.vmem (!%p142_p9), [#allocation2], %s355_s19  ;;  %s603_s29 = scalar_lea.sflag (!%p142_p9), [#allocation3], %s162_s10 }
  0x11   : > { %s289_s24 = sshll.u32 (!%p142_p9), %s164_s20, 4  ;;  %s504_s16 = smov (!%p142_p9), [#allocation2]   ;;  %s596_s24 = int_to_ptr.vmem [resolvable:$true] %s289_s24 }
  0x12   : > { %s440_s30 = scalar_lea.vmem (!%p142_p9), %s596_s24, 128 }
  0x13   : > { %v435_v0 = vld [vmem:[%s644_s1 + $0x18] sm:$0xff]   ;;  %v502_v1 = vmov 0.0   ;;  %v436_v2 = vld [vmem:[%s644_s1 + $0x10] sm:$0xff]   ;;  %vm503_vm0 = vmmov 0   ;;  %s654_s28 = smov (!%p166_p10, %s356_s28), 3  ;;  %v437_v3 = vld [vmem:[%s644_s1 + $0x8] sm:$0xff]   ;;  %p441_p11 = scmp.ne.s32.totalorder %s596_s24, %s440_s30 }
  0x14   : > { %380 = vmatprep.subr.bf16.mxu0 %v502_v1  ;;  %388 = vmatprep.mubr.msk.bf16.mxu0 %vm503_vm0, %v502_v1  ;;  %s357_s4 = sshll.u32 %s654_s28, 2  ;;  %v438_v4 = vld [vmem:[%s644_s1] sm:$0xff]   ;;  %vm219_vm1 = vcmask 523264   ;;  %vm272_vm2 = vcmask 257024   ;;  %s601_s28 = scalar_lea.hbm %s646_s3, %s374_s25 }
  0x15   : > { %381 = vmatpush3.bf16.msra.mxu0 %v435_v0  ;;  %s169_s7 = scalar_lea.vmem %s643_s0, %s357_s4  ;;  %v358_v6 = vld [vmem:[%s645_s2] ss:$0 sm:$0xff]  ;;  %p442_p12 = pnand %p441_p11, %p565_p5 }
  0x16   : > { %382 = vmatprep.subr.bf16.mxu0 %v502_v1  ;;  %v439_v5 = vld [vmem:[%s169_s7] sm:$0xff]   ;;  %s444_s4 = sshll.u32 %s504_s16, 4  ;;  %s445_s4 = int_to_ptr.vmem [resolvable:$false] %s444_s4 }
  0x17   : > { %p443_p13 = pneg %p442_p12  ;;  %s446_s5 = scalar_lea.vmem %s445_s4, 256 }
  0x18   : > { %p447_p0 = scmp.lt.s32.totalorder %s596_s24, %s445_s4  ;;  %p448_p1 = scmp.lt.s32.totalorder %s446_s5, %s440_s30 }
  0x19   : > { %383 = vmatpush3.bf16.msra.mxu0 %v436_v2 }
  0x1a   : > { %384 = vmatprep.subr.bf16.mxu0 %v502_v1  ;;  %p449_p2 = por %p448_p1, %p447_p0 }
  0x1c   : > { %p450_p3 = pnand %p449_p2, %p443_p13 }
  0x1d   : > { %385 = vmatpush3.bf16.msra.mxu0 %v437_v3 }
  0x1e   : > { %386 = vmatprep.subr.bf16.mxu0 %v502_v1 }
  0x21   : > { %387 = vmatpush3.bf16.msra.mxu0 %v438_v4 }
  0x24   : > { %389 = vmatmul.mubr.msk.bf16.vlgmr.msra.gmra.mxu0 %vm219_vm1, %v439_v5 }
  0xe4   : > { %v257_v7 = vpop.f32.mrf.mxu0 }
  0xe5   : > { %v258_v8 = vadd.f32 %v358_v6, %v257_v7 }
  0xe6   : > { %v390_v9 = vpop.f32.mrf.mxu0 }
  0xe7   : > { %v372_v10 = vpack.c.bf16 %v258_v8, %v258_v8 }
  0xe8   : > { %v260_v11 = vpop.f32.mrf.mxu0 }
  0xe9   : > { %273 = vst.msk [vmem:[%s164_s20] sm:$0xf] %vm272_vm2, %v372_v10  ;;  %v261_v12 = vadd.f32 %v358_v6, %v260_v11 }
  0xea   : > { %v391_v13 = vpop.f32.mrf.mxu0 }
  0xeb   : > { %v373_v14 = vpack.c.bf16 %v261_v12, %v261_v12 }
  0xed   : > { %274 = vst.msk [vmem:[%s164_s20 + $0x4] sm:$0xf] %vm272_vm2, %v373_v14 }
  0xee   : > { %453 = shalt.err (!%p450_p3)
}
  0xef   : > { %s454_s6 = scalar_lea.hbm %s601_s28, 128  ;;  %s458_s9 = scalar_lea.hbm %s646_s3, 256 }
  0xf0   : > { %p455_p4 = scmp.ne.s32.totalorder %s601_s28, %s454_s6  ;;  %p459_p9 = scmp.lt.s32.totalorder %s601_s28, %s646_s3 }
  0xf1   : > { %p460_p10 = scmp.lt.s32.totalorder %s458_s9, %s454_s6 }
  0xf2   : > { %p456_p7 = pnand %p455_p4, %p565_p5 }
  0xf3   : > { %p461_p11 = por %p460_p10, %p459_p9 }
  0xf4   : > { %p457_p8 = pneg %p456_p7 }
  0xf6   : > { %p462_p12 = pnand %p461_p11, %p457_p8 }
  0xf8   : > { %465 = shalt.err (!%p462_p12)
}
  0xf9   : > { %s505_s17 = smov 64   ;;  %s506_s19 = smov 4  }
  0xfa   : > { %392 = dma.vmem_to_hbm [thread:$0]  (%p565_p5), %s596_s24, 128, %s601_s28, %s603_s29, %s505_s17, %s505_s17, %s506_s19  }
  0xfb PF: > { %p398_p13 = scmp.ge.s32.totalorder %s500_s15, 2  ;;  %s304_s20 = sand.u32 1, %s488_s12  }
  0xfc   : > { %s305_s25 = scalar_lea.sflag [#allocation3], %s304_s20 }
  0xfd   : > { %p395_p0 = pnand %p398_p13, %p569_p6 }
  0xff   : > { %p396_p1 = pneg %p395_p0 }
 0x101   : > { %483 = dma.done.wait (%p396_p1), %s305_s25, 128  }
 0x102   : > { %485 = vsyncadd (%p396_p1), %s305_s25, 4294967168  ;;  %p13_p2 = scmp.ge.s32.totalorder %s552_s18, 4   ;;  %s649_s12 = smov %s492_s13 }
 0x103   : > { %s650_s13 = smov %s496_s14  ;;  %s651_s14 = smov %s563_s21 }
 0x104   : > { %s652_s15 = smov %s552_s18  ;;  %15 = sbr.rel (!%p13_p2) target bundleno = 3 (0x3), region = 67 }
 0x109   :  { %310 = vsyncpa [#allocation3], 1 }
 0x10a   :  { %312 = vsyncpa [#allocation3 + $0x1], 1 }

</bundles_post_ra>
